<compile_context>
chip_gen: v6e
topology: v6e:2x2x1
jax: 0.10.0
libtpu: 0.0.40
codegen_flags: <defaults>
</compile_context>

<pallas_src>
import functools

import jax
import jax.numpy as jnp
from jax.experimental import pallas as pl
from jax.experimental.pallas import tpu as pltpu


def _flash_head_kernel(xq_ref, xkv_ref, wq_ref, wkv_ref, bq_ref, bkv_ref,
                       o_ref, q_sc, m_sc, l_sc, acc_sc, *, scale):
    # Block shapes:
    #   xq_ref : (1, tq, D)      xkv_ref: (1, tk, D)
    #   wq_ref : (D, Hp)         wkv_ref: (D, 2*Hp)   (cols: [K_pad | V_pad])
    #   bq_ref : (1, Hp)         bkv_ref: (1, 2*Hp)
    #   o_ref  : (1, tq, Hp)
    # Scratch: q_sc (tq, Hp) input-dtype, m_sc/l_sc (tq, 1) f32, acc_sc (tq, Hp) f32
    ki = pl.program_id(2)
    hp = wq_ref.shape[1]

    @pl.when(ki == 0)
    def _init():
        # Project the query tile once per (b, qi); fold the 1/sqrt(H) scale in
        # here (O(S*H) work) instead of scaling the (tq, tk) score tiles.
        q = jnp.dot(xq_ref[0], wq_ref[...], preferred_element_type=jnp.float32)
        q = (q + bq_ref[...]) * scale
        q_sc[...] = q.astype(q_sc.dtype)
        m_sc[...] = jnp.full_like(m_sc, -jnp.inf)
        l_sc[...] = jnp.zeros_like(l_sc)
        acc_sc[...] = jnp.zeros_like(acc_sc)

    # Fused K/V projection for this KV tile (single MXU pass, N = 2*Hp lanes).
    kv = jnp.dot(xkv_ref[0], wkv_ref[...],
                 preferred_element_type=jnp.float32) + bkv_ref[...]
    k = kv[:, :hp].astype(xkv_ref.dtype)      # (tk, Hp), lane-aligned slice
    v = kv[:, hp:].astype(xkv_ref.dtype)      # (tk, Hp), lane-aligned slice

    # Scores for this (query tile, kv tile); padded columns are zero in both
    # q and k so they contribute nothing to the contraction.
    s = jnp.dot(q_sc[...], k.T, preferred_element_type=jnp.float32)   # (tq, tk)

    # Online softmax update.
    m_new = jnp.maximum(m_sc[...], jnp.max(s, axis=-1, keepdims=True))
    alpha = jnp.exp(m_sc[...] - m_new)
    p = jnp.exp(s - m_new)
    l_sc[...] = alpha * l_sc[...] + jnp.sum(p, axis=-1, keepdims=True)
    acc_sc[...] = alpha * acc_sc[...] + jnp.dot(
        p.astype(v.dtype), v, preferred_element_type=jnp.float32)
    m_sc[...] = m_new

    @pl.when(ki == pl.num_programs(2) - 1)
    def _finalize():
        inv_l = pl.reciprocal(l_sc[...], approx=True)
        o_ref[0] = (acc_sc[...] * inv_l).astype(o_ref.dtype)   # dense 128-lane store


def attention_head(x, wq, wk, wv, bq, bk, bv):
    """x: (B, S, d_model); w*: (d_model, head_size); b*: (head_size,)."""
    B, S, D = x.shape
    H = wq.shape[1]
    Hp = ((H + 127) // 128) * 128           # lane-dense (128-multiple) head width

    # Query / KV tile sizes.  Must divide S and keep the sublane dim a multiple
    # of 8 (or equal to S).  At toy S this degenerates to tq = tk = S.
    tq = min(S, 128)
    tk = min(S, 128)
    assert S % tq == 0 and S % tk == 0, "S must be divisible by the tile sizes"

    def pad_cols(w, width):
        return jnp.pad(w, ((0, 0), (0, width - w.shape[1])))

    def pad_bias(b, width):
        return jnp.pad(b, (0, width - b.shape[0]))

    wq_p = pad_cols(wq, Hp)                                        # (D, Hp)
    wkv_p = jnp.concatenate([pad_cols(wk, Hp), pad_cols(wv, Hp)], axis=1)  # (D, 2Hp)
    bq_p = pad_bias(bq, Hp).reshape(1, Hp)
    bkv_p = jnp.concatenate([pad_bias(bk, Hp), pad_bias(bv, Hp)]).reshape(1, 2 * Hp)

    scale = float(1.0 / (H ** 0.5))
    kernel = functools.partial(_flash_head_kernel, scale=scale)

    grid = (B, S // tq, S // tk)

    out_padded = pl.pallas_call(
        kernel,
        out_shape=jax.ShapeDtypeStruct((B, S, Hp), x.dtype),
        grid_spec=pltpu.PrefetchScalarGridSpec(
            num_scalar_prefetch=0,
            grid=grid,
            in_specs=[
                pl.BlockSpec((1, tq, D), lambda b, qi, ki: (b, qi, 0)),   # x (query rows)
                pl.BlockSpec((1, tk, D), lambda b, qi, ki: (b, ki, 0)),   # x (kv rows)
                pl.BlockSpec((D, Hp), lambda b, qi, ki: (0, 0)),          # Wq (padded)
                pl.BlockSpec((D, 2 * Hp), lambda b, qi, ki: (0, 0)),      # W[k|v] (padded)
                pl.BlockSpec((1, Hp), lambda b, qi, ki: (0, 0)),          # bq (padded)
                pl.BlockSpec((1, 2 * Hp), lambda b, qi, ki: (0, 0)),      # b[k|v] (padded)
            ],
            out_specs=pl.BlockSpec((1, tq, Hp), lambda b, qi, ki: (b, qi, 0)),
            scratch_shapes=[
                pltpu.VMEM((tq, Hp), x.dtype),       # cached scaled q tile
                pltpu.VMEM((tq, 1), jnp.float32),    # running max m
                pltpu.VMEM((tq, 1), jnp.float32),    # running denom l
                pltpu.VMEM((tq, Hp), jnp.float32),   # output accumulator
            ],
        ),
        compiler_params=pltpu.CompilerParams(
            dimension_semantics=("parallel", "parallel", "arbitrary"),
            vmem_limit_bytes=32 * 1024 * 1024,   # explicit budget; safe on v5e/v6e/v7x
        ),
    )(x, x, wq_p, wkv_p, bq_p, bkv_p)

    # Drop the lane padding (plain XLA slice outside the kernel).
    return out_padded[..., :H]


def attention_head_ref(x, wq, wk, wv, bq, bk, bv):
    """Pure-JAX reference matching the PyTorch forward."""
    q = jnp.einsum('bsd,dh->bsh', x, wq) + bq
    k = jnp.einsum('bsd,dh->bsh', x, wk) + bk
    v = jnp.einsum('bsd,dh->bsh', x, wv) + bv
    att = jnp.einsum('bqe,bte->bqt', q, k) / (wq.shape[1] ** 0.5)
    att = jax.nn.softmax(att, axis=-1)
    return jnp.einsum('bqt,bte->bqe', att, v)


if __name__ == "__main__":
    B, S, d_model, head_size = 2, 8, 32, 16

    key = jax.random.PRNGKey(0)
    kx, kq, kk, kv, kbq, kbk, kbv = jax.random.split(key, 7)

    x = jax.random.normal(kx, (B, S, d_model), dtype=jnp.float32)

    # Deterministic param init mimicking nn.Linear's U(-1/sqrt(in), 1/sqrt(in)).
    bound = 1.0 / (d_model ** 0.5)
    wq = jax.random.uniform(kq, (d_model, head_size), jnp.float32, -bound, bound)
    wk = jax.random.uniform(kk, (d_model, head_size), jnp.float32, -bound, bound)
    wv = jax.random.uniform(kv, (d_model, head_size), jnp.float32, -bound, bound)
    bq = jax.random.uniform(kbq, (head_size,), jnp.float32, -bound, bound)
    bk = jax.random.uniform(kbk, (head_size,), jnp.float32, -bound, bound)
    bv = jax.random.uniform(kbv, (head_size,), jnp.float32, -bound, bound)

    out = attention_head(x, wq, wk, wv, bq, bk, bv)
    out = jax.block_until_ready(out)

    ref = attention_head_ref(x, wq, wk, wv, bq, bk, bv)
    assert out.shape == (B, S, head_size)
    # Tolerance relaxed slightly: pl.reciprocal(approx=True) introduces ~1e-3
    # relative error in the softmax normalization.
    assert jnp.allclose(out, ref, atol=2e-3, rtol=2e-3), \
        f"max abs err {jnp.max(jnp.abs(out - ref))}"

    print("KERNEL_OK")
</pallas_src>

<mosaic_0001>
module attributes {stable_mosaic.version = 11 : i64} {
  func.func @_flash_head_kernel(%arg0: i32, %arg1: i32, %arg2: i32, %arg3: memref<1x8x32xf32, #tpu.memory_space<vmem>>, %arg4: memref<1x8x32xf32, #tpu.memory_space<vmem>>, %arg5: memref<32x128xf32, #tpu.memory_space<vmem>>, %arg6: memref<32x256xf32, #tpu.memory_space<vmem>>, %arg7: memref<1x128xf32, #tpu.memory_space<vmem>>, %arg8: memref<1x256xf32, #tpu.memory_space<vmem>>, %arg9: memref<1x8x128xf32, #tpu.memory_space<vmem>>, %arg10: memref<8x128xf32, #tpu.memory_space<vmem>>, %arg11: memref<8x1xf32, #tpu.memory_space<vmem>>, %arg12: memref<8x1xf32, #tpu.memory_space<vmem>>, %arg13: memref<8x128xf32, #tpu.memory_space<vmem>>) attributes {dimension_semantics = [#tpu.dimension_semantics<parallel>, #tpu.dimension_semantics<parallel>, #tpu.dimension_semantics<arbitrary>], iteration_bounds = array<i64: 2, 1, 1>, scalar_prefetch = 0 : i64, scratch_operands = 4 : i64, tpu.core_type = #tpu.core_type<tc>, window_params = [{transform_indices = @transform_0, window_bounds = array<i64: 1, 8, 32>}, {transform_indices = @transform_1, window_bounds = array<i64: 1, 8, 32>}, {pipeline_mode = #tpu.pipeline_mode<synchronous>, transform_indices = @transform_2, window_bounds = array<i64: 32, 128>}, {pipeline_mode = #tpu.pipeline_mode<synchronous>, transform_indices = @transform_3, window_bounds = array<i64: 32, 256>}, {pipeline_mode = #tpu.pipeline_mode<synchronous>, transform_indices = @transform_4, window_bounds = array<i64: 1, 128>}, {pipeline_mode = #tpu.pipeline_mode<synchronous>, transform_indices = @transform_5, window_bounds = array<i64: 1, 256>}, {transform_indices = @transform_6, window_bounds = array<i64: 1, 8, 128>}]} {
    %c0_i32 = arith.constant 0 : i32
    %0 = arith.cmpi eq, %arg2, %c0_i32 : i32
    %1 = arith.extui %0 : i1 to i32
    %c0_i32_0 = arith.constant 0 : i32
    %2 = arith.cmpi ne, %1, %c0_i32_0 : i32
    scf.if %2 {
      %c0_29 = arith.constant 0 : index
      %c0_30 = arith.constant 0 : index
      %c0_31 = arith.constant 0 : index
      %41 = vector.load %arg3[%c0_29, %c0_30, %c0_31] : memref<1x8x32xf32, #tpu.memory_space<vmem>>, vector<1x8x32xf32>
      %42 = vector.shape_cast %41 : vector<1x8x32xf32> to vector<8x32xf32>
      %c0_32 = arith.constant 0 : index
      %c0_33 = arith.constant 0 : index
      %43 = vector.load %arg5[%c0_32, %c0_33] : memref<32x128xf32, #tpu.memory_space<vmem>>, vector<32x128xf32>
      %cst_34 = arith.constant dense<0.000000e+00> : vector<8x128xf32>
      %44 = tpu.matmul %42, %43, %cst_34 {dimension_numbers = #tpu.dot_dimension_numbers<[1], [0], [0], [1], [0, 0, 1, 1], [], []>} : vector<8x32xf32>, vector<32x128xf32>, vector<8x128xf32> -> vector<8x128xf32>
      %c0_35 = arith.constant 0 : index
      %c0_36 = arith.constant 0 : index
      %45 = vector.load %arg7[%c0_35, %c0_36] : memref<1x128xf32, #tpu.memory_space<vmem>>, vector<1x128xf32>
      %46 = vector.broadcast %45 : vector<1x128xf32> to vector<8x128xf32>
      %47 = arith.addf %44, %46 : vector<8x128xf32>
      %cst_37 = arith.constant 2.500000e-01 : f32
      %48 = vector.broadcast %cst_37 : f32 to vector<8x128xf32>
      %49 = arith.mulf %47, %48 : vector<8x128xf32>
      %c0_38 = arith.constant 0 : index
      %c0_39 = arith.constant 0 : index
      %50 = vector.load %arg10[%c0_38, %c0_39] : memref<8x128xf32, #tpu.memory_space<vmem>>, vector<8x128xf32>
      tpu.vector_store %arg10[%c0_38, %c0_39], %49 {strides = array<i32>} : memref<8x128xf32, #tpu.memory_space<vmem>>, vector<8x128xf32>,
      %cst_40 = arith.constant 0xFF800000 : f32
      %51 = vector.broadcast %cst_40 : f32 to vector<8x1xf32>
      %c0_41 = arith.constant 0 : index
      %c0_42 = arith.constant 0 : index
      %52 = vector.load %arg11[%c0_41, %c0_42] : memref<8x1xf32, #tpu.memory_space<vmem>>, vector<8x1xf32>
      tpu.vector_store %arg11[%c0_41, %c0_42], %51 {strides = array<i32>} : memref<8x1xf32, #tpu.memory_space<vmem>>, vector<8x1xf32>,
      %cst_43 = arith.constant 0.000000e+00 : f32
      %53 = vector.broadcast %cst_43 : f32 to vector<8x1xf32>
      %c0_44 = arith.constant 0 : index
      %c0_45 = arith.constant 0 : index
      %54 = vector.load %arg12[%c0_44, %c0_45] : memref<8x1xf32, #tpu.memory_space<vmem>>, vector<8x1xf32>
      tpu.vector_store %arg12[%c0_44, %c0_45], %53 {strides = array<i32>} : memref<8x1xf32, #tpu.memory_space<vmem>>, vector<8x1xf32>,
      %cst_46 = arith.constant 0.000000e+00 : f32
      %55 = vector.broadcast %cst_46 : f32 to vector<8x128xf32>
      %c0_47 = arith.constant 0 : index
      %c0_48 = arith.constant 0 : index
      %56 = vector.load %arg13[%c0_47, %c0_48] : memref<8x128xf32, #tpu.memory_space<vmem>>, vector<8x128xf32>
      tpu.vector_store %arg13[%c0_47, %c0_48], %55 {strides = array<i32>} : memref<8x128xf32, #tpu.memory_space<vmem>>, vector<8x128xf32>,
    } else {
    }
    %c0 = arith.constant 0 : index
    %c0_1 = arith.constant 0 : index
    %c0_2 = arith.constant 0 : index
    %3 = vector.load %arg4[%c0, %c0_1, %c0_2] : memref<1x8x32xf32, #tpu.memory_space<vmem>>, vector<1x8x32xf32>
    %4 = vector.shape_cast %3 : vector<1x8x32xf32> to vector<8x32xf32>
    %c0_3 = arith.constant 0 : index
    %c0_4 = arith.constant 0 : index
    %5 = vector.load %arg6[%c0_3, %c0_4] : memref<32x256xf32, #tpu.memory_space<vmem>>, vector<32x256xf32>
    %cst = arith.constant dense<0.000000e+00> : vector<8x256xf32>
    %6 = tpu.matmul %4, %5, %cst {dimension_numbers = #tpu.dot_dimension_numbers<[1], [0], [0], [1], [0, 0, 1, 1], [], []>} : vector<8x32xf32>, vector<32x256xf32>, vector<8x256xf32> -> vector<8x256xf32>
    %c0_5 = arith.constant 0 : index
    %c0_6 = arith.constant 0 : index
    %7 = vector.load %arg8[%c0_5, %c0_6] : memref<1x256xf32, #tpu.memory_space<vmem>>, vector<1x256xf32>
    %8 = vector.broadcast %7 : vector<1x256xf32> to vector<8x256xf32>
    %9 = arith.addf %6, %8 : vector<8x256xf32>
    %10 = vector.extract_strided_slice %9 {offsets = [0, 0], sizes = [8, 128], strides = [1, 1]} : vector<8x256xf32> to vector<8x128xf32>
    %11 = vector.extract_strided_slice %9 {offsets = [0, 128], sizes = [8, 128], strides = [1, 1]} : vector<8x256xf32> to vector<8x128xf32>
    %c0_7 = arith.constant 0 : index
    %c0_8 = arith.constant 0 : index
    %12 = vector.load %arg10[%c0_7, %c0_8] : memref<8x128xf32, #tpu.memory_space<vmem>>, vector<8x128xf32>
    %13 = tpu.transpose %10, [1, 0] : vector<8x128xf32> -> vector<128x8xf32>
    %cst_9 = arith.constant dense<0.000000e+00> : vector<8x8xf32>
    %14 = tpu.matmul %12, %13, %cst_9 {dimension_numbers = #tpu.dot_dimension_numbers<[1], [0], [0], [1], [0, 0, 1, 1], [], []>} : vector<8x128xf32>, vector<128x8xf32>, vector<8x8xf32> -> vector<8x8xf32>
    %c0_10 = arith.constant 0 : index
    %c0_11 = arith.constant 0 : index
    %15 = vector.load %arg11[%c0_10, %c0_11] : memref<8x1xf32, #tpu.memory_space<vmem>>, vector<8x1xf32>
    %cst_12 = arith.constant dense<0xFF800000> : vector<8xf32>
    %16 = vector.multi_reduction <maximumf>, %14, %cst_12 [1] : vector<8x8xf32> to vector<8xf32>
    %17 = vector.shape_cast %16 : vector<8xf32> to vector<8x1xf32>
    %18 = arith.maximumf %15, %17 : vector<8x1xf32>
    %c0_13 = arith.constant 0 : index
    %c0_14 = arith.constant 0 : index
    %19 = vector.load %arg11[%c0_13, %c0_14] : memref<8x1xf32, #tpu.memory_space<vmem>>, vector<8x1xf32>
    %20 = arith.subf %19, %18 : vector<8x1xf32>
    %21 = math.exp %20 : vector<8x1xf32>
    %22 = vector.broadcast %18 : vector<8x1xf32> to vector<8x8xf32>
    %23 = arith.subf %14, %22 : vector<8x8xf32>
    %24 = math.exp %23 : vector<8x8xf32>
    %c0_15 = arith.constant 0 : index
    %c0_16 = arith.constant 0 : index
    %25 = vector.load %arg12[%c0_15, %c0_16] : memref<8x1xf32, #tpu.memory_space<vmem>>, vector<8x1xf32>
    %26 = arith.mulf %21, %25 : vector<8x1xf32>
    %cst_17 = arith.constant dense<0.000000e+00> : vector<8xf32>
    %27 = vector.multi_reduction <add>, %24, %cst_17 [1] : vector<8x8xf32> to vector<8xf32>
    %28 = vector.shape_cast %27 : vector<8xf32> to vector<8x1xf32>
    %29 = arith.addf %26, %28 : vector<8x1xf32>
    %c0_18 = arith.constant 0 : index
    %c0_19 = arith.constant 0 : index
    %30 = vector.load %arg12[%c0_18, %c0_19] : memref<8x1xf32, #tpu.memory_space<vmem>>, vector<8x1xf32>
    tpu.vector_store %arg12[%c0_18, %c0_19], %29 {strides = array<i32>} : memref<8x1xf32, #tpu.memory_space<vmem>>, vector<8x1xf32>,
    %c0_20 = arith.constant 0 : index
    %c0_21 = arith.constant 0 : index
    %31 = vector.load %arg13[%c0_20, %c0_21] : memref<8x128xf32, #tpu.memory_space<vmem>>, vector<8x128xf32>
    %32 = vector.broadcast %21 : vector<8x1xf32> to vector<8x128xf32>
    %33 = arith.mulf %32, %31 : vector<8x128xf32>
    %cst_22 = arith.constant dense<0.000000e+00> : vector<8x128xf32>
    %34 = tpu.matmul %24, %11, %cst_22 {dimension_numbers = #tpu.dot_dimension_numbers<[1], [0], [0], [1], [0, 0, 1, 1], [], []>} : vector<8x8xf32>, vector<8x128xf32>, vector<8x128xf32> -> vector<8x128xf32>
    %35 = arith.addf %33, %34 : vector<8x128xf32>
    %c0_23 = arith.constant 0 : index
    %c0_24 = arith.constant 0 : index
    %36 = vector.load %arg13[%c0_23, %c0_24] : memref<8x128xf32, #tpu.memory_space<vmem>>, vector<8x128xf32>
    tpu.vector_store %arg13[%c0_23, %c0_24], %35 {strides = array<i32>} : memref<8x128xf32, #tpu.memory_space<vmem>>, vector<8x128xf32>,
    %c0_25 = arith.constant 0 : index
    %c0_26 = arith.constant 0 : index
    %37 = vector.load %arg11[%c0_25, %c0_26] : memref<8x1xf32, #tpu.memory_space<vmem>>, vector<8x1xf32>
    tpu.vector_store %arg11[%c0_25, %c0_26], %18 {strides = array<i32>} : memref<8x1xf32, #tpu.memory_space<vmem>>, vector<8x1xf32>,
    %c0_i32_27 = arith.constant 0 : i32
    %38 = arith.cmpi eq, %arg2, %c0_i32_27 : i32
    %39 = arith.extui %38 : i1 to i32
    %c0_i32_28 = arith.constant 0 : i32
    %40 = arith.cmpi ne, %39, %c0_i32_28 : i32
    scf.if %40 {
      %c0_29 = arith.constant 0 : index
      %c0_30 = arith.constant 0 : index
      %41 = vector.load %arg12[%c0_29, %c0_30] : memref<8x1xf32, #tpu.memory_space<vmem>>, vector<8x1xf32>
      %42 = tpu.reciprocal %41 {approx = true} : vector<8x1xf32> -> vector<8x1xf32>
      %c0_31 = arith.constant 0 : index
      %c0_32 = arith.constant 0 : index
      %43 = vector.load %arg13[%c0_31, %c0_32] : memref<8x128xf32, #tpu.memory_space<vmem>>, vector<8x128xf32>
      %44 = vector.broadcast %42 : vector<8x1xf32> to vector<8x128xf32>
      %45 = arith.mulf %43, %44 : vector<8x128xf32>
      %c0_33 = arith.constant 0 : index
      %c0_34 = arith.constant 0 : index
      %c0_35 = arith.constant 0 : index
      %46 = vector.load %arg9[%c0_33, %c0_34, %c0_35] : memref<1x8x128xf32, #tpu.memory_space<vmem>>, vector<1x8x128xf32>
      %47 = vector.shape_cast %46 : vector<1x8x128xf32> to vector<8x128xf32>
      %48 = vector.shape_cast %45 : vector<8x128xf32> to vector<1x8x128xf32>
      tpu.vector_store %arg9[%c0_33, %c0_34, %c0_35], %48 {strides = array<i32>} : memref<1x8x128xf32, #tpu.memory_space<vmem>>, vector<1x8x128xf32>,
    } else {
    }
    return
  }
  func.func @transform_0(%arg0: i32, %arg1: i32, %arg2: i32) -> (i32, i32, i32) {
    %c0_i32 = arith.constant 0 : i32
    %c0_i32_0 = arith.constant 0 : i32
    return %arg0, %arg1, %c0_i32 : i32, i32, i32
  }
  func.func @transform_1(%arg0: i32, %arg1: i32, %arg2: i32) -> (i32, i32, i32) {
    %c0_i32 = arith.constant 0 : i32
    %c0_i32_0 = arith.constant 0 : i32
    return %arg0, %arg2, %c0_i32 : i32, i32, i32
  }
  func.func @transform_2(%arg0: i32, %arg1: i32, %arg2: i32) -> (i32, i32) {
    %c0_i32 = arith.constant 0 : i32
    %c0_i32_0 = arith.constant 0 : i32
    %c0_i32_1 = arith.constant 0 : i32
    return %c0_i32, %c0_i32_0 : i32, i32
  }
  func.func @transform_3(%arg0: i32, %arg1: i32, %arg2: i32) -> (i32, i32) {
    %c0_i32 = arith.constant 0 : i32
    %c0_i32_0 = arith.constant 0 : i32
    %c0_i32_1 = arith.constant 0 : i32
    return %c0_i32, %c0_i32_0 : i32, i32
  }
  func.func @transform_4(%arg0: i32, %arg1: i32, %arg2: i32) -> (i32, i32) {
    %c0_i32 = arith.constant 0 : i32
    %c0_i32_0 = arith.constant 0 : i32
    %c0_i32_1 = arith.constant 0 : i32
    return %c0_i32, %c0_i32_0 : i32, i32
  }
  func.func @transform_5(%arg0: i32, %arg1: i32, %arg2: i32) -> (i32, i32) {
    %c0_i32 = arith.constant 0 : i32
    %c0_i32_0 = arith.constant 0 : i32
    %c0_i32_1 = arith.constant 0 : i32
    return %c0_i32, %c0_i32_0 : i32, i32
  }
  func.func @transform_6(%arg0: i32, %arg1: i32, %arg2: i32) -> (i32, i32, i32) {
    %c0_i32 = arith.constant 0 : i32
    %c0_i32_0 = arith.constant 0 : i32
    return %arg0, %arg1, %c0_i32 : i32, i32, i32
  }
}

</mosaic_0001>

<bundles_post_ra>
// kernel: tpu_custom_call.1
= control target key start
LH: loop header
LB: loop body
LE: loop exit
PB: predicated region body
PF: predicated region fallthrough
CT: control target
= control target key end

     0   :  { %s1523_s0 = inlined_call_operand.hbm [shape: f32[2,8,32], index: 0, kind: input, shape index: {}]   ;;  %s1524_s1 = inlined_call_operand.hbm [shape: f32[2,8,32], index: 1, kind: input, shape index: {}]   ;;  %s1525_s2 = inlined_call_operand.hbm [shape: f32[32,128], index: 2, kind: input, shape index: {}]   ;;  %s1526_s3 = inlined_call_operand.hbm [shape: f32[32,256], index: 3, kind: input, shape index: {}]   ;;  %s1527_s4 = inlined_call_operand.vmem [shape: f32[1,128], index: 4, kind: input, shape index: {}]   ;;  %s1528_s5 = inlined_call_operand.vmem [shape: f32[1,256], index: 5, kind: input, shape index: {}]   ;;  %s1529_s6 = inlined_call_operand.hbm [shape: f32[2,8,128], index: 6, kind: output, shape index: {}]  }
   0x1   :  { %1531 = sst [smem:[#allocation20_spill]] %s1523_s0 }
   0x2   :  { %1532 = sst [smem:[#allocation21_spill]] %s1524_s1 }
   0x3   :  { %1533 = sst [smem:[#allocation22_spill]] %s1525_s2 }
   0x4   :  { %1534 = sst [smem:[#allocation23_spill]] %s1526_s3 }
   0x5   :  { %11 = vsyncpa [#allocation7], 0 }
   0x6   :  { %13 = vsyncpa [#allocation7 + $0x1], 0 }
   0x7   :  { %14 = vsyncpa [#allocation10], 0 }
   0x8   :  { %16 = vsyncpa [#allocation10 + $0x1], 0 }
   0x9   :  { %17 = vsyncpa [#allocation13], 0 }
   0xa   :  { %18 = vsyncpa [#allocation8], 0 }
   0xb   :  { %20 = vsyncpa [#allocation8 + $0x1], 0  ;;  %s1293_s21 = smov 0   ;;  %s1295_s22 = smov 0  }
   0xc   :  { %s1297_s23 = smov 0   ;;  %s1299_s24 = smov 0  }
   0xd   :  { %s1301_s25 = smov 0   ;;  %s1303_s26 = smov 0  }
   0xe LB: > { %s1324_s27 = sadd.s32 4294967295, %s1243_s26   ;;  %s886_s28 = sadd.s32 4294967294, %s1243_s26   ;;  %s1243_s26 = sphi %s1303_s26, %s26_s26   ;;  %s1239_s25 = sphi %s1301_s25, %s1556_s25   ;;  %s1235_s24 = sphi %s1299_s24, %s1555_s24   ;;  %s1231_s23 = sphi %s1297_s23, %s1554_s23   ;;  %s1227_s22 = sphi %s1295_s22, %s1553_s22   ;;  %s1223_s21 = sphi %s1293_s21, %s1552_s21  }
   0xf   : > { %p67_p0 = scmp.ne.s32.totalorder %s1227_s22, %s1223_s21  ;;  %p1530_p1 = scmp.eq.s32.totalorder %s1324_s27, 0 }
  0x10   : > { %p211_p3 = scmp.eq.s32.totalorder %s886_s28, 1  ;;  %p887_p5 = scmp.ge.s32.totalorder %s1243_s26, 1 }
  0x11   : > { %p1333_p4 = por %p1530_p1, %p67_p0  ;;  %p218_p7 = scmp.lt.s32.totalorder %s1243_s26, 3 }
  0x12   : > { %p1338_p6 = por %p211_p3, %p67_p0  ;;  %s1245_s8 = smov [#allocation11]  }
  0x13   : > { %p1343_p8 = pnand %p887_p5, %p218_p7  ;;  %s230_s9 = sshll.u32 %s1245_s8, 4  ;;  %s231_s9 = int_to_ptr.vmem [resolvable:$true] %s230_s9 }
  0x14   : > { %s1536_s30 = scalar_select %p1338_p6, 1, 0 }
  0x15   : > { %p953_p9 = pneg %p1343_p8  ;;  %s1246_s11 = smov [#allocation12]  }
  0x16   : > { %s243_s12 = sshll.u32 %s1246_s11, 4  ;;  %s1054_s13 = scalar_lea.vmem %s231_s9, 512  ;;  %s244_s12 = int_to_ptr.vmem [resolvable:$true] %s243_s12 }
  0x17   : > { %p1352_p11 = pnand %p953_p9, %p1530_p1  ;;  %p1055_p13 = scmp.ne.s32.totalorder %s231_s9, %s1054_s13 }
  0x18   : > { %p1062_p5 = scmp.lt.s32.totalorder %s231_s9, %s231_s9  ;;  %p1063_p7 = scmp.lt.s32.totalorder %s1054_s13, %s1054_s13 }
  0x19   : > { %p1045_p12 = pneg %p1352_p11 }
  0x1a   : > { %p1064_p10 = por %p1063_p7, %p1062_p5 }
  0x1b   : > { %p1057_p0 = pnand %p1055_p13, %p1045_p12 }
  0x1d   : > { %p1058_p3 = pneg %p1057_p0 }
  0x1f   : > { %p1065_p9 = pnand %p1064_p10, %p1058_p3 }
  0x21   : > { %1068 = shalt.err (!%p1065_p9)
}
  0x22   : > { %s1247_s14 = smov 128   ;;  %s1248_s15 = smov 8  }
  0x23   : > { %s1539_s2 = sld [smem:[#allocation22_spill]]  ;;  %s1080_s18 = scalar_lea.vmem %s244_s12, 1024 }
  0x24   : > { %p1081_p1 = scmp.ne.s32.totalorder %s244_s12, %s1080_s18  ;;  %p1088_p2 = scmp.lt.s32.totalorder %s244_s12, %s244_s12 }
  0x25   : > { %p1089_p6 = scmp.lt.s32.totalorder %s1080_s18, %s1080_s18 }
  0x26   : > { %p1083_p13 = pnand %p1081_p1, %p1045_p12 }
  0x27   : > { %p1090_p5 = por %p1089_p6, %p1088_p2 }
  0x28   : > { %p1084_p0 = pneg %p1083_p13 }
  0x29   : > { %956 = dma.hbm_to_vmem [thread:$0]  (!%p1352_p11), %s1539_s2, 512, %s231_s9, [#allocation10], %s1247_s14, %s1247_s14, %s1248_s15  }
  0x2a   : > { %p1091_p10 = pnand %p1090_p5, %p1084_p0 }
  0x2c   : > { %1094 = shalt.err (!%p1091_p10)
}
  0x2d   : > { %s1249_s19 = smov 256   ;;  %s1250_s20 = smov 16  }
  0x2e   : > { %s1540_s3 = sld [smem:[#allocation23_spill]]  ;;  %s45_s9 = sadd.s32 1, %s1239_s25 }
  0x2f   : > { %s54_s11 = sadd.s32 1, %s1231_s23  ;;  %p47_p1 = scmp.ge.s32.totalorder %s45_s9, 2 }
  0x30   : > { %p61_p2 = scmp.ne.s32.totalorder %s1231_s23, %s1227_s22  ;;  %p62_p6 = scmp.eq.s32.totalorder %s1243_s26, 0 }
  0x31   : > { %p973_p12 = scmp.lt.s32.totalorder %s1243_s26, 2  ;;  %s1558_s9 = smov (%p47_p1, %s45_s9), 0 }
  0x32   : > { %p63_p3 = por %p62_p6, %p61_p2  ;;  %p1541_p7 = scmp.eq.s32.totalorder %s1324_s27, 1 }
  0x33   : > { %s49_s10 = ssub.s32 %s1239_s25, %s1558_s9  ;;  %s263_s14 = sand.u32 1, %s1231_s23  }
  0x34   : > { %959 = dma.hbm_to_vmem [thread:$0]  (!%p1352_p11), %s1540_s3, 1024, %s244_s12, [#allocation13], %s1249_s19, %s1249_s19, %s1250_s20  }
  0x35   : > { %p1384_p9 = por %p1541_p7, %p61_p2  ;;  %p52_p13 = scmp.eq.s32.totalorder %s49_s10, 0 }
  0x36   : > { %s891_s12 = sshll.u32 %s263_s14, 3  ;;  %s892_s15 = sshll.u32 %s1239_s25, 7 }
  0x37   : > { %s1393_s16 = scalar_select %p52_p13, %s1231_s23, %s54_s11  }
  0x38   : > { %s1543_s0 = sld [smem:[#allocation20_spill]]  ;;  %s267_s20 = scalar_lea.vmem [#allocation6], %s891_s12 }
  0x39   : > { %s275_s28 = sshll.u32 %s267_s20, 4  ;;  %p1400_p11 = pnand %p973_p12, %p63_p3  ;;  %s276_s28 = int_to_ptr.vmem [resolvable:$true] %s275_s28 }
  0x3a   : > { %s1545_s1 = sld [smem:[#allocation21_spill]]  ;;  %s264_s11 = scalar_lea.sflag [#allocation7], %s263_s14 }
  0x3b   : > { %p1097_p0 = pneg %p1400_p11  ;;  %s1108_s17 = scalar_lea.vmem %s276_s28, 128 }
  0x3c   : > { %p1109_p5 = scmp.ne.s32.totalorder %s276_s28, %s1108_s17  ;;  %s1251_s18 = smov [#allocation6]  }
  0x3d   : > { %s1113_s20 = sshll.u32 %s1251_s18, 4  ;;  %s1114_s20 = int_to_ptr.vmem [resolvable:$false] %s1113_s20 }
  0x3e   : > { %s273_s19 = scalar_lea.hbm %s1543_s0, %s892_s15  ;;  %p1111_p10 = pnand %p1109_p5, %p1097_p0 }
  0x3f   : > { %s1115_s0 = scalar_lea.vmem %s1114_s20, 256  ;;  %p1116_p2 = scmp.lt.s32.totalorder %s276_s28, %s1114_s20 }
  0x40   : > { %s1407_s3 = scalar_lea.hbm %s1545_s1, %s892_s15  ;;  %p1112_p1 = pneg %p1111_p10 }
  0x41   : > { %p1117_p6 = scmp.lt.s32.totalorder %s1115_s0, %s1108_s17 }
  0x43   : > { %p1118_p12 = por %p1117_p6, %p1116_p2 }
  0x45   : > { %p1119_p3 = pnand %p1118_p12, %p1112_p1 }
  0x47   : > { %1122 = shalt.err (!%p1119_p3)
}
  0x48   : > { %963 = dma.hbm_to_vmem [thread:$0]  (!%p1400_p11), %s273_s19, 128, %s276_s28, %s264_s11  }
  0x49   : > { %s282_s2 = sand.u32 1, %s1243_s26   ;;  %s286_s14 = scalar_lea.vmem [#allocation9], %s891_s12 }
  0x4a   : > { %s294_s15 = sshll.u32 %s286_s14, 4  ;;  %s283_s10 = scalar_lea.sflag [#allocation10], %s282_s2  ;;  %s295_s15 = int_to_ptr.vmem [resolvable:$true] %s294_s15 }
  0x4b   : > { %s1136_s1 = scalar_lea.vmem %s295_s15, 128  ;;  %s1252_s0 = smov [#allocation9]  }
  0x4c   : > { %p1137_p7 = scmp.ne.s32.totalorder %s295_s15, %s1136_s1  ;;  %s1141_s17 = sshll.u32 %s1252_s0, 4  ;;  %s1142_s17 = int_to_ptr.vmem [resolvable:$false] %s1141_s17 }
  0x4d   : > { %s1143_s18 = scalar_lea.vmem %s1142_s17, 256  ;;  %p1144_p10 = scmp.lt.s32.totalorder %s295_s15, %s1142_s17 }
  0x4e   : > { %p1139_p13 = pnand %p1137_p7, %p1097_p0  ;;  %p1145_p1 = scmp.lt.s32.totalorder %s1143_s18, %s1136_s1 }
  0x50   : > { %p1140_p5 = pneg %p1139_p13  ;;  %p1146_p2 = por %p1145_p1, %p1144_p10 }
  0x52   : > { %p1147_p6 = pnand %p1146_p2, %p1140_p5 }
  0x54   : > { %1150 = shalt.err (!%p1147_p6)
}
  0x55   : > { %966 = dma.hbm_to_vmem [thread:$0]  (!%p1400_p11), %s1407_s3, 128, %s295_s15, %s283_s10  }
  0x56   : > { %303 = sbr.rel (%p1343_p8) target bundleno = 1087 (0x43f), region = 44  ;;  %s1426_s12 = sand.u32 (!%p1343_p8), 1, %s1227_s22  }
  0x57   : > { %s1429_s19 = sshll.u32 (!%p1343_p8), %s1426_s12, 3  ;;  %s306_s1 = scalar_lea.sflag (!%p1343_p8), [#allocation7], %s1426_s12 }
  0x58   : > { %s309_s28 = scalar_lea.vmem (!%p1343_p8), [#allocation6], %s1429_s19 }
  0x5b   : > { %1202 = dma.done.wait (%p1333_p4), %s306_s1, 128  }
  0x5c   : > { %1204 = vsyncadd (%p1333_p4), %s306_s1, 4294967168  ;;  %s314_s3 = sand.u32 1, %s1324_s27   ;;  %s318_s8 = scalar_lea.vmem [#allocation9], %s1429_s19 }
  0x5d   : > { %s315_s7 = scalar_lea.sflag [#allocation10], %s314_s3 }
  0x5e   : > { %1206 = dma.done.wait (%p1333_p4), %s315_s7, 128  }
  0x5f   : > { %1208 = vsyncadd (%p1333_p4), %s315_s7, 4294967168  ;;  %p1546_p8 = scmp.eq.s32.totalorder %s1324_s27, 0 }
  0x61   : > { %1210 = dma.done.wait (%p1546_p8), [#allocation10], 512   ;;  %p1547_p11 = pmov %p1546_p8 }
  0x62   : > { %p1548_p0 = pmov %p1546_p8 }
  0x63   : > { %1212 = vsyncadd (%p1547_p11), [#allocation10], 4294966784 }
  0x64   : > { %1214 = dma.done.wait (%p1548_p0), [#allocation13], 1024   ;;  %p1549_p12 = pmov %p1548_p0 }
  0x65   : > { %v1253_v0 = vmov 0.0   ;;  %vm1254_vm0 = vmmov 0   ;;  %v464_v1 = vld [vmem:[#allocation12 + $0x38] sm:$0xff]  ;;  %v463_v3 = vld [vmem:[#allocation12 + $0x30] sm:$0xff]  ;;  %v462_v4 = vld [vmem:[#allocation12 + $0x28] sm:$0xff]  ;;  %vm376_vm1 = vcmask 261120   ;;  %v467_v15 = vlaneseq }
  0x66   : > { %1216 = vsyncadd (%p1549_p12), [#allocation13], 4294966272  ;;  %918 = vmatprep.subr.mxu0 %v1253_v0  ;;  %926 = vmatprep.mubr.msk.f32.mxu0 %vm1254_vm0, %v1253_v0  ;;  %v368_v2 = vld [vmem:[#allocation11 + $0x18] sm:$0xff]  ;;  %v367_v5 = vld [vmem:[#allocation11 + $0x10] sm:$0xff]  ;;  %vm452_vm2 = vcmask 7168   ;;  %v1255_v31 = vmov -inf  }
  0x67   : > { %545 = vmatprep.mubr.f32.mxu1 %v1253_v0  ;;  %505 = vmatprep.subr.mxu1 %v464_v1  ;;  %v461_v6 = vld [vmem:[#allocation12 + $0x20] sm:$0xff]  ;;  %v460_v7 = vld [vmem:[#allocation12 + $0x18] sm:$0xff]  ;;  %v366_v8 = vld [vmem:[#allocation11 + $0x8] sm:$0xff]  ;;  %v468_v16 = vshrl.u32 %v467_v15, 7  ;;  %453 = vst.msk [vmem:[#allocation3] sm:$0xff] %vm452_vm2, %v1255_v31  ;;  %vm624_vm3 = vcmask 64512  }
  0x68   : > { %919 = vmatpush3.msra.mxu0 %v368_v2  ;;  %506 = vmatpush1.msra.mxu1 %v463_v3  ;;  %v459_v9 = vld [vmem:[#allocation12 + $0x10] sm:$0xff]  ;;  %v458_v10 = vld [vmem:[#allocation12 + $0x8] sm:$0xff]  ;;  %v365_v11 = vld [vmem:[#allocation11] sm:$0xff]  ;;  %454 = vst.msk [vmem:[#allocation4] sm:$0xff] %vm452_vm2, %v1253_v0  ;;  %v1256_v35 = vmov 0   ;;  %s906_s2 = sshll.u32 %s1235_s24, 7 }
  0x69   : > { %920 = vmatprep.subr.mxu0 %v1253_v0  ;;  %507 = vmatprep.subr.mxu1 %v462_v4  ;;  %v457_v12 = vld [vmem:[#allocation12] sm:$0xff]  ;;  %v456_v14 = vld [vmem:[%s318_s8] sm:$0xff]  ;;  %v469_v17 = vsub.s32 0, %v468_v16  ;;  %v473_v19 = vsub.s32 1, %v468_v16  ;;  %s359_s14 = scalar_lea.vmem [#allocation14], %s1429_s19  ;;  %s757_s17 = scalar_lea.hbm %s1529_s6, %s906_s2 }
  0x6a   : > { %921 = vmatpush3.msra.mxu0 %v367_v5  ;;  %508 = vmatpush1.msra.mxu1 %v461_v6  ;;  %v364_v13 = vld [vmem:[%s309_s28] sm:$0xff]  ;;  %v465_v18 = vld [vmem:[%s1528_s5] sm:$0x3]  ;;  %s759_s15 = sshll.u32 %s359_s14, 4  ;;  %s745_s18 = scalar_lea.sflag [#allocation8], %s1426_s12  ;;  %s760_s15 = int_to_ptr.vmem [resolvable:$true] %s759_s15 }
  0x6b   : > { %922 = vmatprep.subr.mxu0 %v1253_v0  ;;  %509 = vmatprep.subr.mxu1 %v460_v7  ;;  %v901_v20 = vld [vmem:[%s1527_s4] ss:$0 sm:$0xff]  ;;  %v470_v21 = vrot.slane %v465_v18, %v469_v17  ;;  %v474_v23 = vrot.slane %v465_v18, %v473_v19  ;;  %s1151_s1 = scalar_lea.vmem %s760_s15, 128  ;;  %s1257_s28 = smov [#allocation14]  }
  0x6c   : > { %923 = vmatpush3.msra.mxu0 %v366_v8  ;;  %510 = vmatpush1.msra.mxu1 %v459_v9  ;;  %p1152_p4 = scmp.ne.s32.totalorder %s760_s15, %s1151_s1  ;;  %s1155_s3 = sshll.u32 %s1257_s28, 4  ;;  %s1156_s3 = int_to_ptr.vmem [resolvable:$false] %s1155_s3 }
  0x6d   : > { %924 = vmatprep.subr.mxu0 %v1253_v0  ;;  %511 = vmatprep.subr.mxu1 %v458_v10  ;;  %s1157_s24 = scalar_lea.vmem %s1156_s3, 256  ;;  %p1158_p13 = scmp.lt.s32.totalorder %s760_s15, %s1156_s3 }
  0x6e   : > { %925 = vmatpush3.msra.mxu0 %v365_v11  ;;  %512 = vmatpush1.msra.mxu1 %v457_v12  ;;  %v623_v36 = vld [vmem:[#allocation3] sm:$0xff]  ;;  %p1153_p3 = pnand %p1152_p4, %p1384_p9  ;;  %p1159_p5 = scmp.lt.s32.totalorder %s1157_s24, %s1151_s1 }
  0x6f   : > { %927 = vmatmul.mubr.msk.f32.vlgmr.msra.gmra.mxu0 %vm376_vm1, %v364_v13  ;;  %903 = vmatmul.mubr.msk.f32.vlgmr.msra.gmra.mxu1 %vm376_vm1, %v456_v14  ;;  %v640_v47 = vld [vmem:[#allocation4] sm:$0xff] }
  0x70   : > { %929 = vmatprep.subr.mxu0 %v1253_v0  ;;  %934 = vmatprep.subr.mxu1 %v1253_v0  ;;  %p1154_p7 = pneg %p1153_p3  ;;  %p1160_p10 = por %p1159_p5, %p1158_p13 }
  0x71   : > { %931 = vmatprep.mubr.msk.f32.mxu0 %vm1254_vm0, %v1253_v0  ;;  %936 = vmatprep.mubr.msk.f32.mxu1 %vm1254_vm0, %v1253_v0 }
  0x72   : > { %1035 = vset.pattern.permute.xlu0 %v1256_v35  ;;  %1036 = vset.pattern.permute.xlu1 %v1256_v35  ;;  %p1161_p1 = pnand %p1160_p10, %p1154_p7 }
 0x12f   : > { %v446_v22 = vpop.f32.mrf.mxu0  ;;  %v547_v25 = vpop.f32.mrf.mxu1 }
 0x130   : > { %v447_v24 = vadd.f32 %v901_v20, %v446_v22  ;;  %v548_v26 = vadd.f32 %v547_v25, %v470_v21 }
 0x131   : > { %v928_v27 = vpop.f32.mrf.mxu0  ;;  %v549_v29 = vpop.f32.mrf.mxu1 }
 0x132   : > { %v450_v28 = vmul.f32 0.25, %v447_v24  ;;  %v550_v30 = vadd.f32 %v549_v29, %v474_v23  ;;  %930 = vmatpush3.xpose.msra.mxu0 %v548_v26 }
 0x134   : > { %935 = vmatpush3.msra.mxu1 %v550_v30 }
 0x135   : > { %932 = vmatmul.mubr.f32.vlgmr.msra.gmra.mxu0 %v450_v28 }
 0x1f5   : > { %v619_v32 = vpop.f32.mrf.mxu0 }
 0x1f6   : > { %v625_v33 = vsel %vm624_vm3, %v619_v32, -inf }
 0x1f7   : > { %626 = vmax.xlane.f32.xlu0 %v625_v33  ;;  %v933_v34 = vpop.f32.mrf.mxu0 }
 0x280   : > { %v627_v37 = vpop.xlane.xlu0 %626 }
 0x281   : > { %v628_v38 = vmax.f32 %v623_v36, %v627_v37 }
 0x283   : > { %v629_v39 = vsub.f32 %v623_v36, %v628_v38  ;;  %730 = vst.msk [vmem:[#allocation3] sm:$0xff] %vm452_vm2, %v628_v38  ;;  %634 = vperm.xlu0 %1035, %v628_v38  }
 0x285   : > { %v630_v44 = vmul.f32 1.442695, %v629_v39 }
 0x2fe   : > { %v635_v40 = vpop.permute.xlu0 %634 }
 0x2ff   : > { %v637_v41 = vsub.f32 %v619_v32, %v635_v40 }
 0x301   : > { %v638_v42 = vmul.f32 1.442695, %v637_v41 }
 0x303   : > { %1037 = vpow2.f32 %v638_v42 }
 0x304   : > { %1039 = vpow2.f32 %v630_v44 }
 0x310   : > { %v1038_v43 = vpop.eup %1037 }
 0x311   : > { %937 = vmatmul.mubr.msk.f32.vlgmr.msra.gmra.mxu1 %vm624_vm3, %v1038_v43  ;;  %v642_v45 = vsel %vm624_vm3, %v1038_v43, 0.0  ;;  %v1040_v46 = vpop.eup %1039 }
 0x312   : > { %643 = vadd.xlane.f32.xlu1 %v642_v45  ;;  %v641_v48 = vmul.f32 %v1040_v46, %v640_v47 }
 0x323   : > { %651 = vperm.xlu1 %1036, %v1040_v46  }
 0x39b   : > { %v644_v49 = vpop.xlane.xlu1 %643 }
 0x39c   : > { %v645_v50 = vadd.f32 %v644_v49, %v641_v48 }
 0x39e   : > { %647 = vst.msk [vmem:[#allocation4] sm:$0xff] %vm452_vm2, %v645_v50 }
 0x39f   : > { %v652_v55 = vpop.permute.xlu1 %651 }
 0x3a0   : > { %v654_v56 = vmul.f32 0.0, %v652_v55 }
 0x3a5   : > { %v734_v51 = vld [vmem:[#allocation4] sm:$0xff] }
 0x3a6   : > { %1041 = vrcp.f32 %v734_v51 }
 0x3b3   : > { %v1042_v52 = vpop.eup %1041 }
 0x3b4   : > { %739 = vperm.xlu1 %1036, %v1042_v52  }
 0x3d1   : > { %v724_v53 = vpop.f32.mrf.mxu1 }
 0x3d2   : > { %v728_v57 = vadd.f32 %v724_v53, %v654_v56 }
 0x3d3   : > { %v938_v54 = vpop.f32.mrf.mxu1 }
 0x42f   : > { %v740_v58 = vpop.permute.xlu1 %739 }
 0x430   : > { %v742_v59 = vmul.f32 %v740_v58, %v728_v57 }
 0x432   : > { %743 = vst [vmem:[%s359_s14] sm:$0xff] %v742_v59 }
 0x433   : > { %1164 = shalt.err (!%p1161_p1)
}
 0x434   : > { %s1165_s19 = scalar_lea.hbm %s757_s17, 128  ;;  %s1169_s8 = scalar_lea.hbm %s1529_s6, 256 }
 0x435   : > { %p1166_p2 = scmp.ne.s32.totalorder %s757_s17, %s1165_s19  ;;  %p1170_p11 = scmp.lt.s32.totalorder %s757_s17, %s1529_s6 }
 0x436   : > { %p1171_p0 = scmp.lt.s32.totalorder %s1169_s8, %s1165_s19 }
 0x437   : > { %p1167_p6 = pnand %p1166_p2, %p1384_p9 }
 0x438   : > { %p1172_p12 = por %p1171_p0, %p1170_p11 }
 0x439   : > { %p1168_p8 = pneg %p1167_p6 }
 0x43b   : > { %p1173_p4 = pnand %p1172_p12, %p1168_p8 }
 0x43d   : > { %1176 = shalt.err (!%p1173_p4)
}
 0x43e   : > { %951 = dma.vmem_to_hbm [thread:$0]  (%p1384_p9), %s760_s15, 128, %s757_s17, %s745_s18  }
 0x43f PF: > { %s771_s11 = sand.u32 1, %s1223_s21   ;;  %p1550_p3 = scmp.ne.s32.totalorder %s1536_s30, 0 }
 0x440   : > { %p1551_p7 = scmp.ge.s32.totalorder %s1243_s26, 2  ;;  %s772_s20 = scalar_lea.sflag [#allocation8], %s771_s11 }
 0x442   : > { %p968_p13 = pnand %p1551_p7, %p1550_p3 }
 0x444   : > { %p969_p5 = pneg %p968_p13 }
 0x446   : > { %1218 = dma.done.wait (%p969_p5), %s772_s20, 128  }
 0x447   : > { %1220 = vsyncadd (%p969_p5), %s772_s20, 4294967168  ;;  %s26_s26 = sadd.s32 1, %s1243_s26   ;;  %s1552_s21 = smov %s1227_s22 }
 0x448   : > { %p23_p10 = scmp.ge.s32.totalorder %s26_s26, 4   ;;  %s1553_s22 = smov %s1231_s23 }
 0x449   : > { %s1554_s23 = smov %s1393_s16  ;;  %s1555_s24 = smov %s1239_s25 }
 0x44a   : > { %s1556_s25 = smov %s1558_s9  ;;  %25 = sbr.rel (!%p23_p10) target bundleno = 14 (0xe), region = 118 }
 0x44f   :  { %777 = vsyncpa [#allocation7], 1 }
 0x450   :  { %779 = vsyncpa [#allocation7 + $0x1], 1 }
 0x451   :  { %780 = vsyncpa [#allocation10], 1 }
 0x452   :  { %782 = vsyncpa [#allocation10 + $0x1], 1 }
 0x453   :  { %783 = vsyncpa [#allocation13], 1 }
 0x454   :  { %784 = vsyncpa [#allocation8], 1 }
 0x455   :  { %786 = vsyncpa [#allocation8 + $0x1], 1 }

</bundles_post_ra>
